<compile_context>
chip_gen: v7x
topology: tpu7x:2x2x1
jax: 0.10.0
libtpu: 0.0.40
codegen_flags: <defaults>
</compile_context>

<pallas_src>
import jax
import jax.numpy as jnp
from jax.experimental import pallas as pl
from jax.experimental.pallas import tpu as pltpu


def _round_up(n, m):
    return ((n + m - 1) // m) * m


def neg_samp_kernel(z_ref, w_ref, b_ref, o_ref):
    # One fused matmul:  [x | y] @ blockdiag(W1, W2) + [b1 | b2]  ->  [outx | outy]
    h = b_ref.shape[1] // 2
    out = jnp.dot(z_ref[...], w_ref[...],
                  preferred_element_type=jnp.float32) + b_ref[...]   # (TB, 2H)
    outx = out[:, :h]
    outy = out[:, h:]
    s = jnp.sum(outx * outy, axis=1, keepdims=True)                  # (TB, 1)
    # Numerically-robust sigmoid (exp goes to EUP; no overflow path).
    pos = s >= 0.0
    e = jnp.exp(jnp.where(pos, -s, s))
    o_ref[...] = jnp.where(pos, 1.0 / (1.0 + e), e / (1.0 + e)).astype(o_ref.dtype)


def neg_samp_forward(x, y, w1, b1, w2, b2, *, tb=512):
    """x, y: (B, input_size); w*: (input_size, hidden); b*: (1, hidden).
    Returns (B,) = sigmoid(sum_h((x@W1+b1) * (y@W2+b2)))."""
    B, input_size = x.shape
    hidden = w1.shape[1]

    # --- Fuse the two small matmuls into one (block-diagonal weights) ---------
    z = jnp.concatenate([x, y], axis=1).astype(jnp.float32)          # (B, 2*in)
    zeros = jnp.zeros((input_size, hidden), jnp.float32)
    w = jnp.concatenate(
        [jnp.concatenate([w1.astype(jnp.float32), zeros], axis=1),
         jnp.concatenate([zeros, w2.astype(jnp.float32)], axis=1)],
        axis=0)                                                       # (2*in, 2*hid)
    b = jnp.concatenate([b1, b2], axis=1).astype(jnp.float32)         # (1, 2*hid)

    # --- Tile the batch dimension (big tiles, multiple of 8) ------------------
    tb = min(tb, _round_up(B, 8))          # small batches: single full-size tile
    B_pad = _round_up(B, tb)
    if B_pad != B:
        # Padded rows compute sigmoid(b1.b2) garbage; sliced off below.
        z = jnp.pad(z, ((0, B_pad - B), (0, 0)))
    grid = (B_pad // tb,)

    cost = pl.CostEstimate(
        flops=2 * B_pad * (2 * input_size) * (2 * hidden) + 3 * B_pad * 2 * hidden,
        transcendentals=B_pad,
        bytes_accessed=4 * (B_pad * 2 * input_size
                            + (2 * input_size) * (2 * hidden)
                            + 2 * hidden + B_pad),
    )

    out = pl.pallas_call(
        neg_samp_kernel,
        out_shape=jax.ShapeDtypeStruct((B_pad, 1), jnp.float32),
        grid=grid,
        in_specs=[
            # x/y tile marches over the batch; weights/bias stay resident (block 0,0).
            pl.BlockSpec((tb, 2 * input_size), lambda i: (i, 0)),
            pl.BlockSpec(w.shape, lambda i: (0, 0)),
            pl.BlockSpec(b.shape, lambda i: (0, 0)),
        ],
        out_specs=pl.BlockSpec((tb, 1), lambda i: (i, 0)),
        compiler_params=pltpu.CompilerParams(
            dimension_semantics=("parallel",)),   # v7x: shard batch over 2 TCs
        cost_estimate=cost,
    )(z, w, b)
    return out[:B, 0]


def _reference(x, y, w1, b1, w2, b2):
    return jax.nn.sigmoid(((x @ w1 + b1) * (y @ w2 + b2)).sum(axis=1))


if __name__ == "__main__":
    B = 8            # batch
    input_size = 32
    hidden_size = 32

    key = jax.random.PRNGKey(0)
    kx, ky, kw1, kb1, kw2, kb2 = jax.random.split(key, 6)

    # Deterministic parameter init (mimics nn.Linear uniform(-1/sqrt(in), 1/sqrt(in))).
    bound = 1.0 / jnp.sqrt(jnp.float32(input_size))
    w1 = jax.random.uniform(kw1, (input_size, hidden_size), jnp.float32, -bound, bound)
    b1 = jax.random.uniform(kb1, (1, hidden_size), jnp.float32, -bound, bound)
    w2 = jax.random.uniform(kw2, (input_size, hidden_size), jnp.float32, -bound, bound)
    b2 = jax.random.uniform(kb2, (1, hidden_size), jnp.float32, -bound, bound)

    x = jax.random.normal(kx, (B, input_size), jnp.float32)
    y = jax.random.normal(ky, (B, input_size), jnp.float32)

    out = neg_samp_forward(x, y, w1, b1, w2, b2)
    jax.block_until_ready(out)
    ref = _reference(x, y, w1, b1, w2, b2)
    assert out.shape == (B,)
    assert jnp.allclose(out, ref, atol=1e-5, rtol=1e-5)

    # Extra check: multi-tile grid + padded tail (B=20, tb=8 -> grid=(3,), pad 4 rows).
    B2 = 20
    x2 = jax.random.normal(jax.random.PRNGKey(1), (B2, input_size), jnp.float32)
    y2 = jax.random.normal(jax.random.PRNGKey(2), (B2, input_size), jnp.float32)
    out2 = neg_samp_forward(x2, y2, w1, b1, w2, b2, tb=8)
    jax.block_until_ready(out2)
    ref2 = _reference(x2, y2, w1, b1, w2, b2)
    assert out2.shape == (B2,)
    assert jnp.allclose(out2, ref2, atol=1e-5, rtol=1e-5)

    print("KERNEL_OK")
</pallas_src>

<mosaic_0001>
module attributes {stable_mosaic.version = 11 : i64} {
  func.func @neg_samp_kernel(%arg0: i32, %arg1: memref<8x64xf32, #tpu.memory_space<vmem>>, %arg2: memref<64x64xf32, #tpu.memory_space<vmem>>, %arg3: memref<1x64xf32, #tpu.memory_space<vmem>>, %arg4: memref<8x1xf32, #tpu.memory_space<vmem>>) attributes {dimension_semantics = [#tpu.dimension_semantics<parallel>], iteration_bounds = array<i64: 1>, scalar_prefetch = 0 : i64, scratch_operands = 0 : i64, tpu.core_type = #tpu.core_type<tc>, window_params = [{transform_indices = @transform_0, window_bounds = array<i64: 8, 64>}, {pipeline_mode = #tpu.pipeline_mode<synchronous>, transform_indices = @transform_1, window_bounds = array<i64: 64, 64>}, {pipeline_mode = #tpu.pipeline_mode<synchronous>, transform_indices = @transform_2, window_bounds = array<i64: 1, 64>}, {transform_indices = @transform_3, window_bounds = array<i64: 8, 1>}]} {
    %c0 = arith.constant 0 : index
    %c0_0 = arith.constant 0 : index
    %0 = vector.load %arg1[%c0, %c0_0] : memref<8x64xf32, #tpu.memory_space<vmem>>, vector<8x64xf32>
    %c0_1 = arith.constant 0 : index
    %c0_2 = arith.constant 0 : index
    %1 = vector.load %arg2[%c0_1, %c0_2] : memref<64x64xf32, #tpu.memory_space<vmem>>, vector<64x64xf32>
    %cst = arith.constant dense<0.000000e+00> : vector<8x64xf32>
    %2 = tpu.matmul %0, %1, %cst {dimension_numbers = #tpu.dot_dimension_numbers<[1], [0], [0], [1], [0, 0, 1, 1], [], []>} : vector<8x64xf32>, vector<64x64xf32>, vector<8x64xf32> -> vector<8x64xf32>
    %c0_3 = arith.constant 0 : index
    %c0_4 = arith.constant 0 : index
    %3 = vector.load %arg3[%c0_3, %c0_4] : memref<1x64xf32, #tpu.memory_space<vmem>>, vector<1x64xf32>
    %4 = vector.broadcast %3 : vector<1x64xf32> to vector<8x64xf32>
    %5 = arith.addf %2, %4 : vector<8x64xf32>
    %6 = vector.extract_strided_slice %5 {offsets = [0, 0], sizes = [8, 32], strides = [1, 1]} : vector<8x64xf32> to vector<8x32xf32>
    %7 = vector.extract_strided_slice %5 {offsets = [0, 32], sizes = [8, 32], strides = [1, 1]} : vector<8x64xf32> to vector<8x32xf32>
    %8 = arith.mulf %6, %7 : vector<8x32xf32>
    %cst_5 = arith.constant dense<0.000000e+00> : vector<8xf32>
    %9 = vector.multi_reduction <add>, %8, %cst_5 [1] : vector<8x32xf32> to vector<8xf32>
    %10 = vector.shape_cast %9 : vector<8xf32> to vector<8x1xf32>
    %cst_6 = arith.constant 0.000000e+00 : f32
    %11 = vector.broadcast %cst_6 : f32 to vector<8x1xf32>
    %12 = arith.cmpf oge, %10, %11 : vector<8x1xf32>
    %cst_7 = arith.constant 0.000000e+00 : f32
    %13 = vector.broadcast %cst_7 : f32 to vector<8x1xf32>
    %14 = arith.subf %13, %10 : vector<8x1xf32>
    %15 = arith.select %12, %14, %10 : vector<8x1xi1>, vector<8x1xf32>
    %16 = math.exp %15 : vector<8x1xf32>
    %cst_8 = arith.constant 1.000000e+00 : f32
    %17 = vector.broadcast %cst_8 : f32 to vector<8x1xf32>
    %18 = arith.addf %17, %16 : vector<8x1xf32>
    %cst_9 = arith.constant 1.000000e+00 : f32
    %19 = vector.broadcast %cst_9 : f32 to vector<8x1xf32>
    %20 = arith.divf %19, %18 : vector<8x1xf32>
    %cst_10 = arith.constant 1.000000e+00 : f32
    %21 = vector.broadcast %cst_10 : f32 to vector<8x1xf32>
    %22 = arith.addf %21, %16 : vector<8x1xf32>
    %23 = arith.divf %16, %22 : vector<8x1xf32>
    %24 = arith.select %12, %20, %23 : vector<8x1xi1>, vector<8x1xf32>
    %c0_11 = arith.constant 0 : index
    %c0_12 = arith.constant 0 : index
    %25 = vector.load %arg4[%c0_11, %c0_12] : memref<8x1xf32, #tpu.memory_space<vmem>>, vector<8x1xf32>
    tpu.vector_store %arg4[%c0_11, %c0_12], %24 {strides = array<i32>} : memref<8x1xf32, #tpu.memory_space<vmem>>, vector<8x1xf32>,
    return
  }
  func.func @transform_0(%arg0: i32) -> (i32, i32) {
    %c0_i32 = arith.constant 0 : i32
    %c0_i32_0 = arith.constant 0 : i32
    return %arg0, %c0_i32 : i32, i32
  }
  func.func @transform_1(%arg0: i32) -> (i32, i32) {
    %c0_i32 = arith.constant 0 : i32
    %c0_i32_0 = arith.constant 0 : i32
    %c0_i32_1 = arith.constant 0 : i32
    return %c0_i32, %c0_i32_0 : i32, i32
  }
  func.func @transform_2(%arg0: i32) -> (i32, i32) {
    %c0_i32 = arith.constant 0 : i32
    %c0_i32_0 = arith.constant 0 : i32
    %c0_i32_1 = arith.constant 0 : i32
    return %c0_i32, %c0_i32_0 : i32, i32
  }
  func.func @transform_3(%arg0: i32) -> (i32, i32) {
    %c0_i32 = arith.constant 0 : i32
    %c0_i32_0 = arith.constant 0 : i32
    return %arg0, %c0_i32 : i32, i32
  }
}

</mosaic_0001>

<bundles_post_ra>
// kernel: tpu_custom_call.1
= control target key start
LH: loop header
LB: loop body
LE: loop exit
PB: predicated region body
PF: predicated region fallthrough
CT: control target
= control target key end

     0   :  { %8 = vsyncpa [#allocation3], 0  ;;  %s324_s0 = inlined_call_operand.hbm [shape: f32[8,64], index: 0, kind: input, shape index: {}]   ;;  %s325_s1 = inlined_call_operand.hbm [shape: f32[64,64], index: 1, kind: input, shape index: {}]   ;;  %s326_s2 = inlined_call_operand.vmem [shape: f32[1,64], index: 2, kind: input, shape index: {}]   ;;  %s327_s3 = inlined_call_operand.vmem [shape: f32[8,1], index: 3, kind: output, shape index: {}]  }
   0x1   :  { %9 = vsyncpa [#allocation5], 0  ;;  %s259_s12 = smov [#allocation2]   ;;  %s260_s14 = smov [#allocation4]  }
   0x2   :  { %s16_s13 = sshll.u32 %s259_s12, 4  ;;  %s25_s15 = sshll.u32 %s260_s14, 4  ;;  %s17_s13 = int_to_ptr.vmem [resolvable:$true] %s16_s13  ;;  %s287_s15 = int_to_ptr.vmem [resolvable:$true] %s25_s15 }
   0x3   :  { %s211_s18 = scalar_lea.hbm %s324_s0, 128 }
   0x4   :  { %p212_p0 = scmp.ne.s32.totalorder %s324_s0, %s211_s18  ;;  %p215_p1 = scmp.lt.u32.totalorder %s211_s18, %s324_s0 }
   0x6   :  { %p217_p2 = pnand %p215_p1, %p212_p0 }
   0x8   :  { %220 = shalt.err (!%p217_p2)
}
   0x9   :  { %s221_s23 = scalar_lea.vmem %s17_s13, 128  ;;  %p226_p4 = scmp.lt.s32.totalorder %s17_s13, %s17_s13 }
   0xa   :  { %p222_p3 = scmp.ne.s32.totalorder %s17_s13, %s221_s23  ;;  %p227_p5 = scmp.lt.s32.totalorder %s221_s23, %s221_s23 }
   0xc   :  { %p228_p6 = por %p227_p5, %p226_p4 }
   0xe   :  { %p229_p7 = pnand %p228_p6, %p222_p3 }
  0x10   :  { %232 = shalt.err (!%p229_p7)
}
  0x11   :  { %19 = dma.hbm_to_vmem [thread:$0]  %s324_s0, 128, %s17_s13, [#allocation3]  }
  0x12   :  { %s233_s28 = scalar_lea.hbm %s325_s1, 1024 }
  0x13   :  { %p234_p8 = scmp.ne.s32.totalorder %s325_s1, %s233_s28  ;;  %p237_p9 = scmp.lt.u32.totalorder %s233_s28, %s325_s1 }
  0x15   :  { %p239_p10 = pnand %p237_p9, %p234_p8 }
  0x17   :  { %242 = shalt.err (!%p239_p10)
}
  0x18   :  { %s243_s6 = scalar_lea.vmem %s287_s15, 1024  ;;  %p248_p12 = scmp.lt.s32.totalorder %s287_s15, %s287_s15 }
  0x19   :  { %p244_p11 = scmp.ne.s32.totalorder %s287_s15, %s243_s6  ;;  %p249_p13 = scmp.lt.s32.totalorder %s243_s6, %s243_s6 }
  0x1b   :  { %p250_p0 = por %p249_p13, %p248_p12 }
  0x1d   :  { %p251_p1 = pnand %p250_p0, %p244_p11 }
  0x1f   :  { %254 = shalt.err (!%p251_p1)
}
  0x20   :  { %s261_s0 = smov 128   ;;  %s262_s7 = smov 8  }
  0x21   :  { %31 = dma.hbm_to_vmem [thread:$0]  %s325_s1, 1024, %s287_s15, [#allocation5], %s261_s0, %s261_s0, %s262_s7  }
  0x22   :  { %255 = dma.done.wait [#allocation3], 128  }
  0x23   :  { %256 = vsyncadd [#allocation3], 4294967168 }
  0x24   :  { %257 = dma.done.wait [#allocation5], 1024  }
  0x25   :  { %258 = vsyncadd [#allocation5], 4294966272  ;;  %v263_v0 = vmov 0.0|0.0   ;;  %vm264_vm0 = vmmov 0   ;;  %v265_v1 = vmov 0.0   ;;  %v41_v2 = vld [vmem:[#allocation4] sm:$0xff] }
  0x26   :  { %187 = vmatprep.subr.bf16.mxu0 %v263_v0  ;;  %184 = vmatprep.mubr.msk.f32.mxu0 %vm264_vm0, %v265_v1  ;;  %v42_v3 = vld [vmem:[#allocation4 + $0x8] sm:$0xff]  ;;  %v43_v4 = vld [vmem:[#allocation4 + $0x10] sm:$0xff]  ;;  %v44_v6 = vld [vmem:[#allocation4 + $0x18] sm:$0xff]  ;;  %vm56_vm1 = vcmask 523264   ;;  %s266_s11 = smov 96   ;;  %vm135_vm2 = vcmask 261120  }
  0x27   :  { %v188_v5 = vpack.c.bf16 %v42_v3, %v41_v2  ;;  %v191_v7 = vpack.c.bf16 %v44_v6, %v43_v4  ;;  %v45_v8 = vld [vmem:[#allocation4 + $0x20] sm:$0xff]  ;;  %v46_v9 = vld [vmem:[#allocation4 + $0x28] sm:$0xff]  ;;  %v47_v11 = vld [vmem:[#allocation4 + $0x30] sm:$0xff]  ;;  %vm149_vm4 = vcmask 7168  }
  0x28   :  { %v194_v10 = vpack.c.bf16 %v46_v9, %v45_v8  ;;  %v48_v12 = vld [vmem:[#allocation4 + $0x38] sm:$0xff]  ;;  %v157_v15 = vld [vmem:[%s326_s2] ss:$0 sm:$0xff] }
  0x29   :  { %189 = vmatpush3.bf16.msra.mxu0 %v188_v5  ;;  %v197_v13 = vpack.c.bf16 %v48_v12, %v47_v11  ;;  %v40_v14 = vld [vmem:[#allocation2] sm:$0xff] }
  0x2a   :  { %190 = vmatprep.subr.bf16.mxu0 %v263_v0 }
  0x2d   :  { %192 = vmatpush3.bf16.msra.mxu0 %v191_v7 }
  0x2e   :  { %193 = vmatprep.subr.bf16.mxu0 %v263_v0 }
  0x31   :  { %195 = vmatpush3.bf16.msra.mxu0 %v194_v10 }
  0x32   :  { %196 = vmatprep.subr.bf16.mxu0 %v263_v0 }
  0x35   :  { %198 = vmatpush3.bf16.msra.mxu0 %v197_v13 }
  0x38   :  { %185 = vmatmul.mubr.msk.f32.vlgmr.msra.gmra.mrb[0].mxu0 %vm56_vm1, %v40_v14 }
 0x10b   :  { %v126_v16 = vpop.f32.mrb[0].mxu0 }
 0x10c   :  { %v127_v17 = vadd.f32 %v157_v15, %v126_v16  ;;  %v186_v18 = vpop.f32.mrb[1].mxu0 }
 0x10e   :  { %131 = vrot.lane.b32.xlu0 %v127_v17, %s266_s11 }
 0x180   :  { %v132_v19 = vpop.permute.xlu0 %131 }
 0x181   :  { %v134_v20 = vmul.f32 %v132_v19, %v127_v17 }
 0x183   :  { %v136_v21 = vsel %vm135_vm2, %v134_v20, 0.0 }
 0x184   :  { %137 = vadd.xlane.f32.xlu0 %v136_v21 }
 0x211   :  { %v138_v22 = vpop.xlane.xlu0 %137 }
 0x212   :  { %vm139_vm3 = vcmp.ge.f32.partialorder %v138_v22, 0.0  ;;  %v140_v23 = vsub.f32 0.0, %v138_v22 }
 0x214   :  { %v141_v24 = vsel %vm139_vm3, %v140_v23, %v138_v22 }
 0x215   :  { %v142_v25 = vmul.f32 1.442695, %v141_v24 }
 0x217   :  { %207 = vpow2.f32 %v142_v25 }
 0x221   :  { %v208_v26 = vpop.eup %207 }
 0x222   :  { %v144_v27 = vadd.f32 1.0, %v208_v26 }
 0x224   :  { %209 = vrcp.f32 %v144_v27 }
 0x22e   :  { %v210_v28 = vpop.eup %209 }
 0x22f   :  { %v147_v29 = vmul.f32 %v210_v28, %v208_v26 }
 0x231   :  { %v148_v30 = vsel %vm139_vm3, %v210_v28, %v147_v29 }
 0x232   :  { %150 = vst.msk [vmem:[%s327_s3] sm:$0xff] %vm149_vm4, %v148_v30 }
 0x233   :  { %155 = vsyncpa [#allocation3], 1 }
 0x234   :  { %156 = vsyncpa [#allocation5], 1 }

</bundles_post_ra>
